<compile_context>
chip_gen: v5e
topology: v5e:2x2
jax: 0.10.0
libtpu: 0.0.40
codegen_flags: <defaults>
</compile_context>

<pallas_src>
import jax
import jax.numpy as jnp
from jax.experimental import pallas as pl
from jax.experimental.pallas import tpu as pltpu


def _elu_kernel(x_ref, o_ref):
    x = x_ref[...]
    # ELU(alpha=1): x if x > 0 else exp(x) - 1.
    # exp runs on the EUP slot (idle in this mem-bound kernel -> free);
    # clamp its argument so the dead branch can never overflow.
    neg = jnp.exp(jnp.minimum(x, 0.0)) - 1.0
    o_ref[...] = jnp.where(x > 0, x, neg)


def _min_sublanes(dtype) -> int:
    # dtype-aware minimum multiple for the second-to-last block dim.
    return {4: 8, 2: 16, 1: 32}.get(jnp.dtype(dtype).itemsize, 8)


_LANE_CANDIDATES = (4096, 2048, 1024, 512, 256, 128)
# ~2 MiB per block: double-buffered (input + output) = ~8 MiB of VMEM,
# safely under the scoped-VMEM default on every generation
# (v5e 16 MiB, v6e/v7x 32 MiB) while sitting near the HBM roofline.
_TARGET_BLOCK_BYTES = 2 * 1024 * 1024


def _run_elu_2d(x2d: jax.Array, tile_rows: int) -> jax.Array:
    rows, lane = x2d.shape
    grid = (pl.cdiv(rows, tile_rows),)
    return pl.pallas_call(
        _elu_kernel,
        out_shape=jax.ShapeDtypeStruct((rows, lane), x2d.dtype),
        grid_spec=pltpu.PrefetchScalarGridSpec(
            num_scalar_prefetch=0,
            grid=grid,
            in_specs=[pl.BlockSpec((tile_rows, lane), lambda i: (i, 0))],
            out_specs=pl.BlockSpec((tile_rows, lane), lambda i: (i, 0)),
        ),
        compiler_params=pltpu.CompilerParams(
            dimension_semantics=("parallel",)
        ),
    )(x2d)


def elu_pallas(x: jax.Array) -> jax.Array:
    orig_shape = x.shape
    dtype = x.dtype
    n = x.size
    sub = _min_sublanes(dtype)
    itemsize = jnp.dtype(dtype).itemsize
    block_elems = max(sub * 128, _TARGET_BLOCK_BYTES // itemsize)

    # Pick a wide lane (last) dimension that exactly divides the flat length,
    # preferring layouts with at least `sub` rows.  This keeps the output
    # lane-dense (large unmasked vst) and avoids any wrapper-side pad/concat
    # and post-kernel slice (extra HBM round trips) in the common NCHW case.
    lane = None
    for cand in _LANE_CANDIDATES:
        if n % cand == 0 and n // cand >= sub:
            lane = cand
            break
    if lane is None:
        for cand in _LANE_CANDIDATES:
            if n % cand == 0:
                lane = cand
                break

    if lane is not None:
        rows = n // lane
        max_rows = max(sub, (block_elems // lane) // sub * sub)
        if rows <= max_rows:
            tile_rows = rows      # single block == full array (always legal)
        else:
            tile_rows = max_rows  # multiple of `sub`; ~2 MiB block, many grid
                                  # steps so v7x can shard across both TCs;
                                  # ragged last block is masked by Pallas.
        out2d = _run_elu_2d(jnp.reshape(x, (rows, lane)), tile_rows)
        return jnp.reshape(out2d, orig_shape)

    # Rare fallback: flat length is not a multiple of 128 — pad once, slice once.
    lane = 128
    tile_elems = sub * lane
    n_pad = ((n + tile_elems - 1) // tile_elems) * tile_elems
    xf = jnp.pad(jnp.reshape(x, (n,)), (0, n_pad - n))
    rows = n_pad // lane
    max_rows = max(sub, (block_elems // lane) // sub * sub)
    tile_rows = rows if rows <= max_rows else max_rows
    out2d = _run_elu_2d(jnp.reshape(xf, (rows, lane)), tile_rows)
    return jnp.reshape(jnp.reshape(out2d, (n_pad,))[:n], orig_shape)


if __name__ == "__main__":
    key = jax.random.PRNGKey(0)
    # NCHW input, consistent with the PyTorch module's expected activation.
    x = jax.random.normal(key, (2, 4, 16, 16), dtype=jnp.float32)

    y = jax.block_until_ready(elu_pallas(x))

    # sanity check against pure-JAX reference
    ref = jnp.where(x > 0, x, jnp.exp(jnp.minimum(x, 0.0)) - 1.0)
    assert y.shape == x.shape and y.dtype == x.dtype
    assert jnp.max(jnp.abs(y - ref)) < 1e-6

    print("KERNEL_OK")
</pallas_src>

<mosaic_0001>
module attributes {stable_mosaic.version = 11 : i64} {
  func.func @_elu_kernel(%arg0: i32, %arg1: memref<8x256xf32, #tpu.memory_space<vmem>>, %arg2: memref<8x256xf32, #tpu.memory_space<vmem>>) attributes {dimension_semantics = [#tpu.dimension_semantics<parallel>], iteration_bounds = array<i64: 1>, scalar_prefetch = 0 : i64, scratch_operands = 0 : i64, tpu.core_type = #tpu.core_type<tc>, window_params = [{transform_indices = @transform_0, window_bounds = array<i64: 8, 256>}, {transform_indices = @transform_1, window_bounds = array<i64: 8, 256>}]} {
    %c0 = arith.constant 0 : index
    %c0_0 = arith.constant 0 : index
    %0 = vector.load %arg1[%c0, %c0_0] : memref<8x256xf32, #tpu.memory_space<vmem>>, vector<8x256xf32>
    %cst = arith.constant 0.000000e+00 : f32
    %1 = vector.broadcast %cst : f32 to vector<8x256xf32>
    %2 = arith.minimumf %0, %1 : vector<8x256xf32>
    %3 = math.exp %2 : vector<8x256xf32>
    %cst_1 = arith.constant 1.000000e+00 : f32
    %4 = vector.broadcast %cst_1 : f32 to vector<8x256xf32>
    %5 = arith.subf %3, %4 : vector<8x256xf32>
    %cst_2 = arith.constant 0.000000e+00 : f32
    %6 = vector.broadcast %cst_2 : f32 to vector<8x256xf32>
    %7 = arith.cmpf ogt, %0, %6 : vector<8x256xf32>
    %8 = arith.select %7, %0, %5 : vector<8x256xi1>, vector<8x256xf32>
    %c0_3 = arith.constant 0 : index
    %c0_4 = arith.constant 0 : index
    %9 = vector.load %arg2[%c0_3, %c0_4] : memref<8x256xf32, #tpu.memory_space<vmem>>, vector<8x256xf32>
    tpu.vector_store %arg2[%c0_3, %c0_4], %8 {strides = array<i32>} : memref<8x256xf32, #tpu.memory_space<vmem>>, vector<8x256xf32>,
    return
  }
  func.func @transform_0(%arg0: i32) -> (i32, i32) {
    %c0_i32 = arith.constant 0 : i32
    %c0_i32_0 = arith.constant 0 : i32
    return %arg0, %c0_i32 : i32, i32
  }
  func.func @transform_1(%arg0: i32) -> (i32, i32) {
    %c0_i32 = arith.constant 0 : i32
    %c0_i32_0 = arith.constant 0 : i32
    return %arg0, %c0_i32 : i32, i32
  }
}

</mosaic_0001>

<bundles_post_ra>
// kernel: tpu_custom_call.1
= control target key start
LH: loop header
LB: loop body
LE: loop exit
PB: predicated region body
PF: predicated region fallthrough
CT: control target
= control target key end

     0   :  { %6 = vsyncpa [#allocation3], 0  ;;  %s134_s0 = inlined_call_operand.hbm [shape: f32[8,256], index: 0, kind: input, shape index: {}]   ;;  %s135_s1 = inlined_call_operand.hbm [shape: f32[8,256], index: 1, kind: output, shape index: {}]  }
   0x1   :  { %7 = vsyncpa [#allocation4], 0  ;;  %s13_s8 = sshll.u32 %s134_s0, 4  ;;  %s116_s9 = smov [#allocation2]   ;;  %s14_s8 = int_to_ptr.hbm [resolvable:$true] %s13_s8 }
   0x2   :  { %s15_s10 = sshll.u32 %s116_s9, 4  ;;  %s16_s10 = int_to_ptr.vmem [resolvable:$true] %s15_s10 }
   0x3   :  { %18 = dma.hbm_to_vmem [thread:$0]  %s14_s8, 256, %s16_s10, [#allocation3]  }
   0x4   :  { %112 = dma.done.wait [#allocation3], 256  }
   0x5   :  { %113 = vsyncadd [#allocation3], 4294967040  ;;  %v23_v0 = vld [vmem:[#allocation2] sm:$0xff]  ;;  %v24_v1 = vld [vmem:[#allocation2 + $0x8] sm:$0xff]  ;;  %s117_s11 = smov [#allocation5]   ;;  %s46_s14 = sshll.u32 %s135_s1, 4  ;;  %s47_s14 = int_to_ptr.hbm [resolvable:$true] %s46_s14 }
   0x6   :  { %v25_v2 = vmin.f32 %v23_v0, 0.0  ;;  %v26_v3 = vmin.f32 %v24_v1, 0.0  ;;  %vm33_vm0 = vcmp.gt.f32.partialorder %v23_v0, 0.0  ;;  %s44_s12 = sshll.u32 %s117_s11, 4  ;;  %vm34_vm1 = vcmp.gt.f32.partialorder %v24_v1, 0.0  ;;  %s45_s12 = int_to_ptr.vmem [resolvable:$true] %s44_s12 }
   0x8   :  { %v27_v4 = vmul.f32 1.442695, %v25_v2  ;;  %v29_v5 = vmul.f32 1.442695, %v26_v3 }
   0xa   :  { %60 = vpow2.f32 %v27_v4 }
   0xb   :  { %62 = vpow2.f32 %v29_v5 }
  0x10   :  { %v61_v6 = vpop.eup %60 }
  0x11   :  { %v63_v7 = vpop.eup %62  ;;  %v56_v8 = vadd.f32 -1.0, %v61_v6 }
  0x12   :  { %v57_v9 = vadd.f32 -1.0, %v63_v7 }
  0x13   :  { %v35_v10 = vsel %vm33_vm0, %v23_v0, %v56_v8 }
  0x14   :  { %37 = vst [vmem:[#allocation5] sm:$0xff] %v35_v10  ;;  %v36_v11 = vsel %vm34_vm1, %v24_v1, %v57_v9 }
  0x15   :  { %38 = vst [vmem:[#allocation5 + $0x8] sm:$0xff] %v36_v11 }
  0x16   :  { %49 = dma.vmem_to_hbm [thread:$0]  %s45_s12, 256, %s47_s14, [#allocation4]  }
  0x17   :  { %114 = dma.done.wait [#allocation4], 256  }
  0x18   :  { %115 = vsyncadd [#allocation4], 4294967040 }
  0x19   :  { %54 = vsyncpa [#allocation3], 1 }
  0x1a   :  { %55 = vsyncpa [#allocation4], 1 }

</bundles_post_ra>
